<compile_context>
chip_gen: v7x
topology: tpu7x:2x2x1
jax: 0.10.0
libtpu: 0.0.40
codegen_flags: <defaults>
</compile_context>

<pallas_src>
import jax
import jax.numpy as jnp
from jax.experimental import pallas as pl
from jax.experimental.pallas import tpu as pltpu


def _cdiv(a, b):
    return -(-a // b)


def conv_mlp_kernel(x_ref, w1t_ref, b1_ref, w2t_ref, b2_ref, o_ref):
    # x_ref:   (Nb, C_in, tm)   activation block, spatial on the lane axis
    # w1t_ref: (hidden, C_in)   fc1 weight, pre-transposed (grid-invariant)
    # b1_ref:  (hidden, 1)      f32
    # w2t_ref: (C_out, hidden)  fc2 weight, pre-transposed (grid-invariant)
    # b2_ref:  (C_out, 1)       f32
    # o_ref:   (Nb, C_out, tm)  lane-dense output block
    w1t = w1t_ref[...]
    b1 = b1_ref[...]
    w2t = w2t_ref[...]
    b2 = b2_ref[...]
    nb = x_ref.shape[0]
    # Short static unroll over the folded batch slice (nb is capped small by the wrapper).
    for n in range(nb):
        x = x_ref[n]
        if x.dtype != w1t.dtype:
            x = x.astype(w1t.dtype)          # keep both MXU inputs in one dtype (bf16 path symmetric)
        h = jnp.dot(w1t, x, preferred_element_type=jnp.float32)
        h = jnp.maximum(h + b1, 0.0)         # fc1 bias + ReLU in f32 (norm=Identity, dropout p=0)
        if h.dtype != w2t.dtype:
            h = h.astype(w2t.dtype)          # no-op on the default f32 path (v5e-friendly)
        o = jnp.dot(w2t, h, preferred_element_type=jnp.float32)
        o_ref[n] = (o + b2).astype(o_ref.dtype)


def _vmem_capacity_bytes():
    try:
        cap = int(pltpu.get_tpu_info().vmem_capacity_bytes)
        if cap > 0:
            return cap
    except Exception:
        pass
    return 64 << 20  # conservative fallback = v7x per-TensorCore VMEM


def _choose_tiles(N, HW, C_in, C_out, hidden, act_itm, w_itm, vmem_cap,
                  stream_budget=2 << 20, max_batch_fold=8):
    """Pick (batch block Nb, spatial lane tile tm).

    Each grid step should stream ~stream_budget bytes of activations+outputs so the fixed
    ~0.35 us per-step pipeline cost is amortized, while the per-step working set stays under
    ~75% of physical VMEM (weights counted double-buffered as the worst case)."""
    vmem_budget = int(0.75 * vmem_cap)
    headroom = 4 << 20                                     # Mosaic internal scratch etc.
    w_bytes = 2 * (hidden * C_in + C_out * hidden) * w_itm + 2 * (hidden + C_out) * 4

    def vmem_need(nb, tm):
        act = 2 * nb * (C_in + C_out) * tm * act_itm       # double-buffered in/out blocks
        inter = (hidden + C_out) * tm * 4                  # live f32 intermediates per image
        return act + inter + w_bytes + headroom

    per_lane = (C_in + C_out) * act_itm                    # streamed bytes per lane per image

    # --- spatial (lane) tile: full extent if small, else a lane-dense multiple of 128 ---
    if HW <= 256:
        tm = HW
    else:
        want = max(int(stream_budget // per_lane), 128)
        tm = max(128, min((want // 128) * 128, (HW // 128) * 128))
    # Shrink if the f32 intermediate (large hidden) would blow the VMEM budget.
    while tm > 128 and vmem_need(1, tm) > vmem_budget:
        tm = max(128, ((tm // 2) // 128) * 128)
    # TODO(synk): if even tm=128 cannot fit (extremely large hidden), add a K-tiled hidden axis
    # ('arbitrary' grid dim + f32 VMEM accumulator) instead of materializing (hidden, tm).

    # --- batch folding: amortize per-step overhead when HW alone cannot hit the byte budget ---
    nb = 1
    if N > 1 and per_lane * tm < stream_budget:
        nb = min(N, max_batch_fold, max(1, int(stream_budget // max(per_lane * tm, 1))))
        while nb > 1 and vmem_need(nb, tm) > vmem_budget:
            nb -= 1

    # --- megacore (v7x) balance: keep >=2 grid steps when there is more than one unit of work ---
    if _cdiv(N, nb) * _cdiv(HW, tm) < 2:
        if HW >= 256:
            tm = max(128, ((HW // 2) // 128) * 128)        # split spatial first (preferred)
        elif N >= 2:
            nb = max(1, _cdiv(N, 2))

    # Keep batch blocks exact (no ragged batch blocks); ragged spatial blocks are masked by Pallas
    # and safe because every output column depends only on its own input column.
    while N % nb:
        nb -= 1
    return nb, tm


def prepare_conv_mlp_params(w1, b1, w2, b2, *, compute_dtype=None):
    """Hoisted, call-once weight prep: pre-transpose the 1x1-conv matrices (and optionally
    pre-cast to e.g. bf16) so the per-forward wrapper makes no weight copies in HBM."""
    wdt = compute_dtype if compute_dtype is not None else w1.dtype
    w1t = jnp.transpose(w1).astype(wdt)            # (hidden, C_in)
    w2t = jnp.transpose(w2).astype(wdt)            # (C_out, hidden)
    b1c = b1.reshape(-1, 1).astype(jnp.float32)    # bias-add / ReLU stay in f32
    b2c = b2.reshape(-1, 1).astype(jnp.float32)
    return w1t, b1c, w2t, b2c


def conv_mlp_apply(x_nchw, w1t, b1c, w2t, b2c, *, compute_dtype=None):
    """ConvMlp forward on NCHW input using prepared (pre-transposed) params."""
    N, C_in, H, W = x_nchw.shape
    hidden = w1t.shape[0]
    C_out = w2t.shape[0]
    HW = H * W

    act_dtype = jnp.dtype(compute_dtype) if compute_dtype is not None else x_nchw.dtype
    # Channels-first with spatial flattened onto the lane axis: pure reshape, no HBM transpose.
    x3 = x_nchw.reshape(N, C_in, HW)
    if x3.dtype != act_dtype:
        x3 = x3.astype(act_dtype)   # bf16-on-the-stream option halves the dominant HBM traffic

    act_itm = jnp.dtype(act_dtype).itemsize
    w_itm = jnp.dtype(w1t.dtype).itemsize
    vmem_cap = _vmem_capacity_bytes()
    nb, tm = _choose_tiles(N, HW, C_in, C_out, hidden, act_itm, w_itm, vmem_cap)
    grid = (_cdiv(N, nb), _cdiv(HW, tm))

    # Advisory cost estimate for XLA's scheduler.  (With tiny channel counts MXU occupancy is
    # ~1-3%; the kernel is stream / per-step-overhead bound, so no matmul micro-opts here.)
    flops = 2 * N * HW * (C_in * hidden + hidden * C_out)
    bytes_accessed = (N * HW * (C_in + C_out) * act_itm
                      + (w1t.size + w2t.size) * w_itm + (hidden + C_out) * 4)

    # Per-generation VMEM limit derived from real capacity (v5e/v6e: 128 MiB, v7x: 64 MiB per TC).
    vmem_est = (2 * nb * (C_in + C_out) * tm * act_itm
                + 2 * (w1t.size + w2t.size) * w_itm + 2 * (hidden + C_out) * 4
                + (hidden + C_out) * tm * 4)
    vmem_limit = int(min(max(vmem_est + (8 << 20), 32 << 20), int(0.85 * vmem_cap)))

    out_shape = jax.ShapeDtypeStruct((N, C_out, HW), act_dtype)

    def build(single_buffer_weights):
        def wspec(shape):
            idx = lambda i, j, _nd=len(shape): (0,) * _nd
            if single_buffer_weights:
                # Grid-invariant operands: double-buffering them only doubles resident VMEM.
                return pl.BlockSpec(shape, idx, pipeline_mode=pl.Buffered(1))
            return pl.BlockSpec(shape, idx)

        return pl.pallas_call(
            conv_mlp_kernel,
            out_shape=out_shape,
            grid_spec=pltpu.PrefetchScalarGridSpec(
                num_scalar_prefetch=0,
                grid=grid,
                in_specs=[
                    pl.BlockSpec((nb, C_in, tm), lambda i, j: (i, 0, j)),   # activations
                    wspec((hidden, C_in)),                                   # fc1 weight^T
                    wspec((hidden, 1)),                                      # fc1 bias
                    wspec((C_out, hidden)),                                  # fc2 weight^T
                    wspec((C_out, 1)),                                       # fc2 bias
                ],
                out_specs=pl.BlockSpec((nb, C_out, tm), lambda i, j: (i, 0, j)),
            ),
            compiler_params=pltpu.CompilerParams(
                dimension_semantics=("parallel", "parallel"),
                vmem_limit_bytes=vmem_limit,
            ),
            cost_estimate=pl.CostEstimate(
                flops=flops, transcendentals=0, bytes_accessed=bytes_accessed),
        )

    try:
        out3 = build(single_buffer_weights=True)(x3, w1t, b1c, w2t, b2c)
    except Exception:
        # pipeline_mode=pl.Buffered(1) not supported by this jax/Mosaic version -> fall back to
        # default double-buffering (identical math, just more resident weight VMEM).
        out3 = build(single_buffer_weights=False)(x3, w1t, b1c, w2t, b2c)

    # (N, C_out, HW) -> (N, C_out, H, W): free reshape, already NCHW.
    return out3.reshape(N, C_out, H, W)


def conv_mlp(x_nchw, w1, b1, w2, b2, *, compute_dtype=None):
    """Convenience wrapper: prepare params then apply.  For repeated forwards, call
    prepare_conv_mlp_params() once at init and reuse its outputs with conv_mlp_apply()."""
    params = prepare_conv_mlp_params(w1, b1, w2, b2, compute_dtype=compute_dtype)
    return conv_mlp_apply(x_nchw, *params, compute_dtype=compute_dtype)


if __name__ == "__main__":
    # Small shapes consistent with the module: batch=2, in_features=4,
    # hidden_features=32, out_features=4, spatial 16x16.
    N, C_in, H, W = 2, 4, 16, 16
    hidden, C_out = 32, 4

    key = jax.random.PRNGKey(0)
    kx, kw1, kb1, kw2, kb2 = jax.random.split(key, 5)

    x = jax.random.normal(kx, (N, C_in, H, W), dtype=jnp.float32)
    # Conv2d(kernel_size=1) weights stored as (in, out) matrices (equivalent to PyTorch's
    # (out, in, 1, 1) squeezed and transposed).
    w1 = jax.random.normal(kw1, (C_in, hidden), dtype=jnp.float32) * 0.1
    b1 = jax.random.normal(kb1, (hidden,), dtype=jnp.float32) * 0.1
    w2 = jax.random.normal(kw2, (hidden, C_out), dtype=jnp.float32) * 0.1
    b2 = jax.random.normal(kb2, (C_out,), dtype=jnp.float32) * 0.1

    out = conv_mlp(x, w1, b1, w2, b2)
    out = jax.block_until_ready(out)

    # Pure-JAX reference (same math, no Pallas) to sanity-check semantics.
    x_rows = jnp.transpose(x, (0, 2, 3, 1)).reshape(-1, C_in)
    ref_rows = jnp.maximum(x_rows @ w1 + b1, 0.0) @ w2 + b2
    ref = jnp.transpose(ref_rows.reshape(N, H, W, C_out), (0, 3, 1, 2))
    assert out.shape == (N, C_out, H, W)
    assert jnp.allclose(out, ref, atol=1e-5, rtol=1e-5)

    print("KERNEL_OK")
</pallas_src>

<mosaic_0001>
module attributes {stable_mosaic.version = 11 : i64} {
  func.func @conv_mlp_kernel(%arg0: i32, %arg1: i32, %arg2: memref<2x4x128xf32, #tpu.memory_space<vmem>>, %arg3: memref<32x4xf32, #tpu.memory_space<vmem>>, %arg4: memref<32x1xf32, #tpu.memory_space<vmem>>, %arg5: memref<4x32xf32, #tpu.memory_space<vmem>>, %arg6: memref<4x1xf32, #tpu.memory_space<vmem>>, %arg7: memref<2x4x128xf32, #tpu.memory_space<vmem>>) attributes {dimension_semantics = [#tpu.dimension_semantics<parallel>, #tpu.dimension_semantics<parallel>], iteration_bounds = array<i64: 1, 2>, scalar_prefetch = 0 : i64, scratch_operands = 0 : i64, tpu.core_type = #tpu.core_type<tc>, window_params = [{transform_indices = @transform_0, window_bounds = array<i64: 2, 4, 128>}, {pipeline_mode = #tpu.pipeline_mode<synchronous>, transform_indices = @transform_1, window_bounds = array<i64: 32, 4>}, {pipeline_mode = #tpu.pipeline_mode<synchronous>, transform_indices = @transform_2, window_bounds = array<i64: 32, 1>}, {pipeline_mode = #tpu.pipeline_mode<synchronous>, transform_indices = @transform_3, window_bounds = array<i64: 4, 32>}, {pipeline_mode = #tpu.pipeline_mode<synchronous>, transform_indices = @transform_4, window_bounds = array<i64: 4, 1>}, {transform_indices = @transform_5, window_bounds = array<i64: 2, 4, 128>}]} {
    %c0 = arith.constant 0 : index
    %c0_0 = arith.constant 0 : index
    %0 = vector.load %arg3[%c0, %c0_0] : memref<32x4xf32, #tpu.memory_space<vmem>>, vector<32x4xf32>
    %c0_1 = arith.constant 0 : index
    %c0_2 = arith.constant 0 : index
    %1 = vector.load %arg4[%c0_1, %c0_2] : memref<32x1xf32, #tpu.memory_space<vmem>>, vector<32x1xf32>
    %c0_3 = arith.constant 0 : index
    %c0_4 = arith.constant 0 : index
    %2 = vector.load %arg5[%c0_3, %c0_4] : memref<4x32xf32, #tpu.memory_space<vmem>>, vector<4x32xf32>
    %c0_5 = arith.constant 0 : index
    %c0_6 = arith.constant 0 : index
    %3 = vector.load %arg6[%c0_5, %c0_6] : memref<4x1xf32, #tpu.memory_space<vmem>>, vector<4x1xf32>
    %c0_7 = arith.constant 0 : index
    %c0_8 = arith.constant 0 : index
    %c0_9 = arith.constant 0 : index
    %4 = vector.load %arg2[%c0_7, %c0_8, %c0_9] : memref<2x4x128xf32, #tpu.memory_space<vmem>>, vector<1x4x128xf32>
    %5 = vector.shape_cast %4 : vector<1x4x128xf32> to vector<4x128xf32>
    %cst = arith.constant dense<0.000000e+00> : vector<32x128xf32>
    %6 = tpu.matmul %0, %5, %cst {dimension_numbers = #tpu.dot_dimension_numbers<[1], [0], [0], [1], [0, 0, 1, 1], [], []>} : vector<32x4xf32>, vector<4x128xf32>, vector<32x128xf32> -> vector<32x128xf32>
    %7 = vector.broadcast %1 : vector<32x1xf32> to vector<32x128xf32>
    %8 = arith.addf %6, %7 : vector<32x128xf32>
    %cst_10 = arith.constant 0.000000e+00 : f32
    %9 = vector.broadcast %cst_10 : f32 to vector<32x128xf32>
    %10 = arith.maximumf %8, %9 : vector<32x128xf32>
    %cst_11 = arith.constant dense<0.000000e+00> : vector<4x128xf32>
    %11 = tpu.matmul %2, %10, %cst_11 {dimension_numbers = #tpu.dot_dimension_numbers<[1], [0], [0], [1], [0, 0, 1, 1], [], []>} : vector<4x32xf32>, vector<32x128xf32>, vector<4x128xf32> -> vector<4x128xf32>
    %12 = vector.broadcast %3 : vector<4x1xf32> to vector<4x128xf32>
    %13 = arith.addf %11, %12 : vector<4x128xf32>
    %c0_12 = arith.constant 0 : index
    %c0_13 = arith.constant 0 : index
    %c0_14 = arith.constant 0 : index
    %14 = vector.load %arg7[%c0_12, %c0_13, %c0_14] : memref<2x4x128xf32, #tpu.memory_space<vmem>>, vector<1x4x128xf32>
    %15 = vector.shape_cast %14 : vector<1x4x128xf32> to vector<4x128xf32>
    %16 = vector.shape_cast %13 : vector<4x128xf32> to vector<1x4x128xf32>
    tpu.vector_store %arg7[%c0_12, %c0_13, %c0_14], %16 {strides = array<i32>} : memref<2x4x128xf32, #tpu.memory_space<vmem>>, vector<1x4x128xf32>,
    %c1 = arith.constant 1 : index
    %c0_15 = arith.constant 0 : index
    %c0_16 = arith.constant 0 : index
    %17 = vector.load %arg2[%c1, %c0_15, %c0_16] : memref<2x4x128xf32, #tpu.memory_space<vmem>>, vector<1x4x128xf32>
    %18 = vector.shape_cast %17 : vector<1x4x128xf32> to vector<4x128xf32>
    %cst_17 = arith.constant dense<0.000000e+00> : vector<32x128xf32>
    %19 = tpu.matmul %0, %18, %cst_17 {dimension_numbers = #tpu.dot_dimension_numbers<[1], [0], [0], [1], [0, 0, 1, 1], [], []>} : vector<32x4xf32>, vector<4x128xf32>, vector<32x128xf32> -> vector<32x128xf32>
    %20 = vector.broadcast %1 : vector<32x1xf32> to vector<32x128xf32>
    %21 = arith.addf %19, %20 : vector<32x128xf32>
    %cst_18 = arith.constant 0.000000e+00 : f32
    %22 = vector.broadcast %cst_18 : f32 to vector<32x128xf32>
    %23 = arith.maximumf %21, %22 : vector<32x128xf32>
    %cst_19 = arith.constant dense<0.000000e+00> : vector<4x128xf32>
    %24 = tpu.matmul %2, %23, %cst_19 {dimension_numbers = #tpu.dot_dimension_numbers<[1], [0], [0], [1], [0, 0, 1, 1], [], []>} : vector<4x32xf32>, vector<32x128xf32>, vector<4x128xf32> -> vector<4x128xf32>
    %25 = vector.broadcast %3 : vector<4x1xf32> to vector<4x128xf32>
    %26 = arith.addf %24, %25 : vector<4x128xf32>
    %c1_20 = arith.constant 1 : index
    %c0_21 = arith.constant 0 : index
    %c0_22 = arith.constant 0 : index
    %27 = vector.load %arg7[%c1_20, %c0_21, %c0_22] : memref<2x4x128xf32, #tpu.memory_space<vmem>>, vector<1x4x128xf32>
    %28 = vector.shape_cast %27 : vector<1x4x128xf32> to vector<4x128xf32>
    %29 = vector.shape_cast %26 : vector<4x128xf32> to vector<1x4x128xf32>
    tpu.vector_store %arg7[%c1_20, %c0_21, %c0_22], %29 {strides = array<i32>} : memref<2x4x128xf32, #tpu.memory_space<vmem>>, vector<1x4x128xf32>,
    return
  }
  func.func @transform_0(%arg0: i32, %arg1: i32) -> (i32, i32, i32) {
    %c0_i32 = arith.constant 0 : i32
    %c0_i32_0 = arith.constant 0 : i32
    return %arg0, %c0_i32, %arg1 : i32, i32, i32
  }
  func.func @transform_1(%arg0: i32, %arg1: i32) -> (i32, i32) {
    %c0_i32 = arith.constant 0 : i32
    %c0_i32_0 = arith.constant 0 : i32
    %c0_i32_1 = arith.constant 0 : i32
    return %c0_i32, %c0_i32_0 : i32, i32
  }
  func.func @transform_2(%arg0: i32, %arg1: i32) -> (i32, i32) {
    %c0_i32 = arith.constant 0 : i32
    %c0_i32_0 = arith.constant 0 : i32
    %c0_i32_1 = arith.constant 0 : i32
    return %c0_i32, %c0_i32_0 : i32, i32
  }
  func.func @transform_3(%arg0: i32, %arg1: i32) -> (i32, i32) {
    %c0_i32 = arith.constant 0 : i32
    %c0_i32_0 = arith.constant 0 : i32
    %c0_i32_1 = arith.constant 0 : i32
    return %c0_i32, %c0_i32_0 : i32, i32
  }
  func.func @transform_4(%arg0: i32, %arg1: i32) -> (i32, i32) {
    %c0_i32 = arith.constant 0 : i32
    %c0_i32_0 = arith.constant 0 : i32
    %c0_i32_1 = arith.constant 0 : i32
    return %c0_i32, %c0_i32_0 : i32, i32
  }
  func.func @transform_5(%arg0: i32, %arg1: i32) -> (i32, i32, i32) {
    %c0_i32 = arith.constant 0 : i32
    %c0_i32_0 = arith.constant 0 : i32
    return %arg0, %c0_i32, %arg1 : i32, i32, i32
  }
}

module attributes {stable_mosaic.version = 11 : i64} {
  func.func @conv_mlp_kernel(%arg0: i32, %arg1: i32, %arg2: memref<2x4x128xf32, #tpu.memory_space<vmem>>, %arg3: memref<32x4xf32, #tpu.memory_space<vmem>>, %arg4: memref<32x1xf32, #tpu.memory_space<vmem>>, %arg5: memref<4x32xf32, #tpu.memory_space<vmem>>, %arg6: memref<4x1xf32, #tpu.memory_space<vmem>>, %arg7: memref<2x4x128xf32, #tpu.memory_space<vmem>>) attributes {dimension_semantics = [#tpu.dimension_semantics<parallel>, #tpu.dimension_semantics<parallel>], iteration_bounds = array<i64: 1, 2>, scalar_prefetch = 0 : i64, scratch_operands = 0 : i64, tpu.core_type = #tpu.core_type<tc>, window_params = [{transform_indices = @transform_0, window_bounds = array<i64: 2, 4, 128>}, {pipeline_mode = #tpu.pipeline_mode<synchronous>, transform_indices = @transform_1, window_bounds = array<i64: 32, 4>}, {pipeline_mode = #tpu.pipeline_mode<synchronous>, transform_indices = @transform_2, window_bounds = array<i64: 32, 1>}, {pipeline_mode = #tpu.pipeline_mode<synchronous>, transform_indices = @transform_3, window_bounds = array<i64: 4, 32>}, {pipeline_mode = #tpu.pipeline_mode<synchronous>, transform_indices = @transform_4, window_bounds = array<i64: 4, 1>}, {transform_indices = @transform_5, window_bounds = array<i64: 2, 4, 128>}]} {
    %c0 = arith.constant 0 : index
    %c0_0 = arith.constant 0 : index
    %0 = vector.load %arg3[%c0, %c0_0] : memref<32x4xf32, #tpu.memory_space<vmem>>, vector<32x4xf32>
    %c0_1 = arith.constant 0 : index
    %c0_2 = arith.constant 0 : index
    %1 = vector.load %arg4[%c0_1, %c0_2] : memref<32x1xf32, #tpu.memory_space<vmem>>, vector<32x1xf32>
    %c0_3 = arith.constant 0 : index
    %c0_4 = arith.constant 0 : index
    %2 = vector.load %arg5[%c0_3, %c0_4] : memref<4x32xf32, #tpu.memory_space<vmem>>, vector<4x32xf32>
    %c0_5 = arith.constant 0 : index
    %c0_6 = arith.constant 0 : index
    %3 = vector.load %arg6[%c0_5, %c0_6] : memref<4x1xf32, #tpu.memory_space<vmem>>, vector<4x1xf32>
    %c0_7 = arith.constant 0 : index
    %c0_8 = arith.constant 0 : index
    %c0_9 = arith.constant 0 : index
    %4 = vector.load %arg2[%c0_7, %c0_8, %c0_9] : memref<2x4x128xf32, #tpu.memory_space<vmem>>, vector<1x4x128xf32>
    %5 = vector.shape_cast %4 : vector<1x4x128xf32> to vector<4x128xf32>
    %cst = arith.constant dense<0.000000e+00> : vector<32x128xf32>
    %6 = tpu.matmul %0, %5, %cst {dimension_numbers = #tpu.dot_dimension_numbers<[1], [0], [0], [1], [0, 0, 1, 1], [], []>} : vector<32x4xf32>, vector<4x128xf32>, vector<32x128xf32> -> vector<32x128xf32>
    %7 = vector.broadcast %1 : vector<32x1xf32> to vector<32x128xf32>
    %8 = arith.addf %6, %7 : vector<32x128xf32>
    %cst_10 = arith.constant 0.000000e+00 : f32
    %9 = vector.broadcast %cst_10 : f32 to vector<32x128xf32>
    %10 = arith.maximumf %8, %9 : vector<32x128xf32>
    %cst_11 = arith.constant dense<0.000000e+00> : vector<4x128xf32>
    %11 = tpu.matmul %2, %10, %cst_11 {dimension_numbers = #tpu.dot_dimension_numbers<[1], [0], [0], [1], [0, 0, 1, 1], [], []>} : vector<4x32xf32>, vector<32x128xf32>, vector<4x128xf32> -> vector<4x128xf32>
    %12 = vector.broadcast %3 : vector<4x1xf32> to vector<4x128xf32>
    %13 = arith.addf %11, %12 : vector<4x128xf32>
    %c0_12 = arith.constant 0 : index
    %c0_13 = arith.constant 0 : index
    %c0_14 = arith.constant 0 : index
    %14 = vector.load %arg7[%c0_12, %c0_13, %c0_14] : memref<2x4x128xf32, #tpu.memory_space<vmem>>, vector<1x4x128xf32>
    %15 = vector.shape_cast %14 : vector<1x4x128xf32> to vector<4x128xf32>
    %16 = vector.shape_cast %13 : vector<4x128xf32> to vector<1x4x128xf32>
    tpu.vector_store %arg7[%c0_12, %c0_13, %c0_14], %16 {strides = array<i32>} : memref<2x4x128xf32, #tpu.memory_space<vmem>>, vector<1x4x128xf32>,
    %c1 = arith.constant 1 : index
    %c0_15 = arith.constant 0 : index
    %c0_16 = arith.constant 0 : index
    %17 = vector.load %arg2[%c1, %c0_15, %c0_16] : memref<2x4x128xf32, #tpu.memory_space<vmem>>, vector<1x4x128xf32>
    %18 = vector.shape_cast %17 : vector<1x4x128xf32> to vector<4x128xf32>
    %cst_17 = arith.constant dense<0.000000e+00> : vector<32x128xf32>
    %19 = tpu.matmul %0, %18, %cst_17 {dimension_numbers = #tpu.dot_dimension_numbers<[1], [0], [0], [1], [0, 0, 1, 1], [], []>} : vector<32x4xf32>, vector<4x128xf32>, vector<32x128xf32> -> vector<32x128xf32>
    %20 = vector.broadcast %1 : vector<32x1xf32> to vector<32x128xf32>
    %21 = arith.addf %19, %20 : vector<32x128xf32>
    %cst_18 = arith.constant 0.000000e+00 : f32
    %22 = vector.broadcast %cst_18 : f32 to vector<32x128xf32>
    %23 = arith.maximumf %21, %22 : vector<32x128xf32>
    %cst_19 = arith.constant dense<0.000000e+00> : vector<4x128xf32>
    %24 = tpu.matmul %2, %23, %cst_19 {dimension_numbers = #tpu.dot_dimension_numbers<[1], [0], [0], [1], [0, 0, 1, 1], [], []>} : vector<4x32xf32>, vector<32x128xf32>, vector<4x128xf32> -> vector<4x128xf32>
    %25 = vector.broadcast %3 : vector<4x1xf32> to vector<4x128xf32>
    %26 = arith.addf %24, %25 : vector<4x128xf32>
    %c1_20 = arith.constant 1 : index
    %c0_21 = arith.constant 0 : index
    %c0_22 = arith.constant 0 : index
    %27 = vector.load %arg7[%c1_20, %c0_21, %c0_22] : memref<2x4x128xf32, #tpu.memory_space<vmem>>, vector<1x4x128xf32>
    %28 = vector.shape_cast %27 : vector<1x4x128xf32> to vector<4x128xf32>
    %29 = vector.shape_cast %26 : vector<4x128xf32> to vector<1x4x128xf32>
    tpu.vector_store %arg7[%c1_20, %c0_21, %c0_22], %29 {strides = array<i32>} : memref<2x4x128xf32, #tpu.memory_space<vmem>>, vector<1x4x128xf32>,
    return
  }
  func.func @transform_0(%arg0: i32, %arg1: i32) -> (i32, i32, i32) {
    %c0_i32 = arith.constant 0 : i32
    %c0_i32_0 = arith.constant 0 : i32
    return %arg0, %c0_i32, %arg1 : i32, i32, i32
  }
  func.func @transform_1(%arg0: i32, %arg1: i32) -> (i32, i32) {
    %c0_i32 = arith.constant 0 : i32
    %c0_i32_0 = arith.constant 0 : i32
    %c0_i32_1 = arith.constant 0 : i32
    return %c0_i32, %c0_i32_0 : i32, i32
  }
  func.func @transform_2(%arg0: i32, %arg1: i32) -> (i32, i32) {
    %c0_i32 = arith.constant 0 : i32
    %c0_i32_0 = arith.constant 0 : i32
    %c0_i32_1 = arith.constant 0 : i32
    return %c0_i32, %c0_i32_0 : i32, i32
  }
  func.func @transform_3(%arg0: i32, %arg1: i32) -> (i32, i32) {
    %c0_i32 = arith.constant 0 : i32
    %c0_i32_0 = arith.constant 0 : i32
    %c0_i32_1 = arith.constant 0 : i32
    return %c0_i32, %c0_i32_0 : i32, i32
  }
  func.func @transform_4(%arg0: i32, %arg1: i32) -> (i32, i32) {
    %c0_i32 = arith.constant 0 : i32
    %c0_i32_0 = arith.constant 0 : i32
    %c0_i32_1 = arith.constant 0 : i32
    return %c0_i32, %c0_i32_0 : i32, i32
  }
  func.func @transform_5(%arg0: i32, %arg1: i32) -> (i32, i32, i32) {
    %c0_i32 = arith.constant 0 : i32
    %c0_i32_0 = arith.constant 0 : i32
    return %arg0, %c0_i32, %arg1 : i32, i32, i32
  }
}

</mosaic_0001>

<bundles_post_ra>
// kernel: tpu_custom_call.1
= control target key start
LH: loop header
LB: loop body
LE: loop exit
PB: predicated region body
PF: predicated region fallthrough
CT: control target
= control target key end

     0   :  { %10 = vsyncpa [#allocation4], 0  ;;  %s1219_s0 = inlined_call_operand.vmem [shape: f32[2,4,256], index: 0, kind: input, shape index: {}]   ;;  %s1220_s1 = inlined_call_operand.vmem [shape: f32[32,4], index: 1, kind: input, shape index: {}]   ;;  %s1221_s2 = inlined_call_operand.vmem [shape: f32[32,1], index: 2, kind: input, shape index: {}]   ;;  %s1222_s3 = inlined_call_operand.vmem [shape: f32[4,32], index: 3, kind: input, shape index: {}]   ;;  %s1223_s4 = inlined_call_operand.vmem [shape: f32[4,1], index: 4, kind: input, shape index: {}]   ;;  %s1224_s5 = inlined_call_operand.hbm [shape: f32[2,4,256], index: 5, kind: output, shape index: {}]  }
   0x1   :  { %12 = vsyncpa [#allocation4 + $0x1], 0  ;;  %s1047_s18 = smov 0   ;;  %s1049_s19 = smov 0  }
   0x2   :  { %s1051_s20 = smov 0   ;;  %s1053_s21 = smov 0  }
   0x3   :  { %s1055_s22 = smov 0   ;;  %s1057_s23 = smov 0  }
   0x4 LB: > { %s768_s24 = sadd.s32 4294967295, %s1007_s23   ;;  %s769_s25 = sadd.s32 4294967294, %s1007_s23   ;;  %s1007_s23 = sphi %s1057_s23, %s18_s23   ;;  %s1003_s22 = sphi %s1055_s22, %s1231_s22   ;;  %s999_s21 = sphi %s1053_s21, %s1230_s21   ;;  %s995_s20 = sphi %s1051_s20, %s1229_s20   ;;  %s991_s19 = sphi %s1049_s19, %s1228_s19   ;;  %s987_s18 = sphi %s1047_s18, %s1227_s18  }
   0x5   : > { %s27_s26 = sadd.s32 1, %s1003_s22  ;;  %s39_s27 = sadd.s32 1, %s995_s20 }
   0x6   : > { %p28_p0 = scmp.ge.s32.totalorder %s27_s26, 2  ;;  %p46_p1 = scmp.ne.s32.totalorder %s995_s20, %s991_s19 }
   0x7   : > { %p47_p2 = scmp.eq.s32.totalorder %s1007_s23, 0  ;;  %p162_p3 = scmp.eq.s32.totalorder %s768_s24, 1 }
   0x8   : > { %s1233_s26 = smov (%p28_p0, %s27_s26), 0  ;;  %p167_p6 = scmp.ne.s32.totalorder %s991_s19, %s987_s18 }
   0x9   : > { %p48_p4 = por %p47_p2, %p46_p1  ;;  %p1086_p5 = por %p162_p3, %p46_p1 }
   0xa   : > { %s35_s29 = ssub.s32 %s1003_s22, %s1233_s26  ;;  %p168_p8 = scmp.eq.s32.totalorder %s769_s25, 1 }
   0xb   : > { %p37_p7 = scmp.eq.s32.totalorder %s35_s29, 0  ;;  %p771_p10 = scmp.ge.s32.totalorder %s1007_s23, 2 }
   0xc   : > { %p1097_p9 = por %p168_p8, %p167_p6 }
   0xd   : > { %s1095_s30 = scalar_select %p37_p7, %s995_s20, %s39_s27  }
   0xe   : > { %196 = sbr.rel (%p771_p10) target bundleno = 28 (0x1c), region = 32 }
  0x15   : > { %199 = sbr.rel (!%p48_p4) target bundleno = 28 (0x1c), region = 36  ;;  %s201_s7 = sand.u32 (%p48_p4), 1, %s995_s20  }
  0x16   : > { %s773_s8 = sshll.u32 (%p48_p4), %s1003_s22, 2  ;;  %s772_s9 = sshll.u32 (%p48_p4), %s201_s7, 3 }
  0x17   : > { %s208_s12 = scalar_lea.vmem (%p48_p4), %s1219_s0, %s773_s8  ;;  %s203_s13 = scalar_lea.vmem (%p48_p4), [#allocation2], %s772_s9 }
  0x18   : > { %v224_v0 = vld [vmem:[%s208_s12] sm:$0xf] (%p48_p4)  ;;  %v226_v1 = vld [vmem:[%s208_s12 + $0x8] sm:$0xf] (%p48_p4) }
  0x19   : > { %225 = vst [vmem:[%s203_s13] sm:$0xf] (%p48_p4), %v224_v0  ;;  %227 = vst [vmem:[%s203_s13 + $0x4] sm:$0xf] (%p48_p4), %v226_v1 }
  0x1c PF: > { %p774_p11 = scmp.ge.s32.totalorder %s1007_s23, 1  ;;  %p253_p12 = scmp.lt.s32.totalorder %s1007_s23, 3 }
  0x1e   : > { %p254_p13 = pnand %p774_p11, %p253_p12 }
  0x1f   : > { %s260_s14 = sand.u32 (!%p254_p13), 1, %s991_s19   ;;  %v289_v2 = vld [vmem:[%s1220_s1] sm:$0xff] (!%p254_p13)  ;;  %vm320_vm0 = vcmask (!%p254_p13), 31744   ;;  %vm333_vm1 = vcmask (!%p254_p13), 1043456   ;;  %v1009_v4 = vmov (!%p254_p13), 0   ;;  %v295_v5 = vld [vmem:[%s1221_s2 + $0x10] sm:$0xff] (!%p254_p13) }
  0x20   : > { %257 = sbr.rel (%p254_p13) target bundleno = 501 (0x1f5), region = 77  ;;  %s1117_s17 = sshll.u32 (!%p254_p13), %s260_s14, 3  ;;  %817 = vmatprep.mubr.msk.f32.mxu0 (!%p254_p13), %vm320_vm0, %v289_v2  ;;  %v293_v3 = vld [vmem:[%s1221_s2] sm:$0xff] (!%p254_p13)  ;;  %927 = vset.pattern.permute.xlu0 (!%p254_p13), %v1009_v4  ;;  %v290_v8 = vld [vmem:[%s1220_s1 + $0x8] sm:$0xff] (!%p254_p13)  ;;  %v291_v9 = vld [vmem:[%s1220_s1 + $0x10] sm:$0xff] (!%p254_p13)  ;;  %v1010_v14 = vmov (!%p254_p13), 0.0|0.0  }
  0x21   : > { %928 = vset.pattern.permute.xlu1 (!%p254_p13), %v1009_v4  ;;  %s262_s7 = scalar_lea.vmem (!%p254_p13), [#allocation2], %s1117_s17  ;;  %302 = vperm.xlu0 (!%p254_p13), %927, %v293_v3   ;;  %v294_v10 = vld [vmem:[%s1221_s2 + $0x8] sm:$0xff] (!%p254_p13)  ;;  %v296_v11 = vld [vmem:[%s1221_s2 + $0x18] sm:$0xff] (!%p254_p13)  ;;  %v298_v13 = vld [vmem:[%s1223_s4] sm:$0xf] (!%p254_p13)  ;;  %vm1011_vm2 = vmmov (!%p254_p13), 0  }
  0x22   : > { %v299_v6 = vld [vmem:[%s262_s7] sm:$0xf] (!%p254_p13)  ;;  %v783_v7 = vld [vmem:[%s262_s7 + $0x4] sm:$0xf] (!%p254_p13)  ;;  %312 = vperm.xlu1 (!%p254_p13), %928, %v295_v5   ;;  %v292_v12 = vld [vmem:[%s1220_s1 + $0x18] sm:$0xff] (!%p254_p13)  ;;  %853 = vmatprep.subr.bf16.mxu1 (!%p254_p13), %v1010_v14  ;;  %v1012_v15 = vmov (!%p254_p13), 0.0  }
  0x23   : > { %815 = vmatprep.subr.msk.mxu0 (!%p254_p13), %vm333_vm1, %v299_v6  ;;  %831 = vmatprep.mubr.msk.f32.mxu1 (!%p254_p13), %vm1011_vm2, %v1012_v15  ;;  %v297_v41 = vld [vmem:[%s1222_s3] sm:$0xf] (!%p254_p13)  ;;  %vm431_vm3 = vcmask (!%p254_p13), 261120   ;;  %s286_s9 = scalar_lea.vmem (!%p254_p13), [#allocation3], %s1117_s17  ;;  %s792_s11 = sshll.u32 (!%p254_p13), %s999_s21, 6 }
  0x24   : > { %816 = vmatpush3.msk.msra.mxu0 (!%p254_p13), %vm333_vm1, %v299_v6  ;;  %s688_s10 = sshll.u32 (!%p254_p13), %s286_s9, 4  ;;  %s1168_s15 = scalar_lea.hbm (!%p254_p13), %s1224_s5, %s792_s11  ;;  %s1163_s10 = int_to_ptr.vmem [resolvable:$true] %s688_s10 }
  0x25   : > { %818 = vmatmul.mubr.msk.f32.vlgmr.msra.gmra.mrb[0].mxu0 (!%p254_p13), %vm320_vm0, %v290_v8  ;;  %834 = vmatprep.subr.msk.mxu0 (!%p254_p13), %vm333_vm1, %v783_v7  ;;  %s1172_s16 = scalar_lea.sflag (!%p254_p13), [#allocation4], %s260_s14  ;;  %s929_s17 = scalar_lea.vmem (!%p254_p13), %s1163_s10, 128 }
  0x26   : > { %835 = vmatpush3.msk.msra.mxu0 (!%p254_p13), %vm333_vm1, %v783_v7  ;;  %820 = vmatprep.mubr.msk.f32.mxu0 (!%p254_p13), %vm320_vm0, %v291_v9  ;;  %p930_p0 = scmp.ne.s32.totalorder (!%p254_p13), %s1163_s10, %s929_s17  ;;  %s1013_s21 = smov (!%p254_p13), [#allocation3]  }
  0x27   : > { %307 = vperm.xlu0 %927, %v294_v10   ;;  %317 = vperm.xlu1 %928, %v296_v11   ;;  %s933_s24 = sshll.u32 %s1013_s21, 4  ;;  %s934_s24 = int_to_ptr.vmem [resolvable:$false] %s933_s24 }
  0x28   : > { %p931_p1 = pnand %p930_p0, %p1086_p5  ;;  %s935_s25 = scalar_lea.vmem %s934_s24, 256 }
  0x29   : > { %821 = vmatmul.mubr.msk.f32.gmra.mrb[2].mxu0 %vm320_vm0, %v292_v12  ;;  %p936_p3 = scmp.lt.s32.totalorder %s1163_s10, %s934_s24  ;;  %p937_p4 = scmp.lt.s32.totalorder %s935_s25, %s929_s17 }
  0x2a   : > { %836 = vmatprep.mubr.msk.f32.mxu0 %vm320_vm0, %v289_v2  ;;  %p932_p2 = pneg %p931_p1 }
  0x2b   : > { %428 = vperm.xlu0 %927, %v298_v13   ;;  %p938_p6 = por %p937_p4, %p936_p3 }
  0x2d   : > { %837 = vmatmul.mubr.msk.f32.vlgmr.msra.gmra.mrb[4].mxu0 %vm320_vm0, %v290_v8  ;;  %p939_p7 = pnand %p938_p6, %p932_p2 }
  0x2e   : > { %839 = vmatprep.mubr.msk.f32.mxu0 %vm320_vm0, %v291_v9 }
  0x31   : > { %840 = vmatmul.mubr.msk.f32.gmra.mrb[6].mxu0 %vm320_vm0, %v292_v12 }
  0xa0   : > { %v303_v16 = vpop.permute.xlu0 %302 }
  0xa1   : > { %v313_v17 = vpop.permute.xlu1 %312 }
  0xa6   : > { %v308_v18 = vpop.permute.xlu0 %307  ;;  %v318_v25 = vpop.permute.xlu1 %317 }
  0xaa   : > { %v429_v49 = vpop.permute.xlu0 %428 }
  0xf8   : > { %v819_v19 = vpop.f32.mrb[0].mxu0 }
  0xf9   : > { %v409_v20 = vadd.f32 %v819_v19, %v308_v18  ;;  %v403_v21 = vpop.f32.mrb[1].mxu0 }
  0xfa   : > { %v404_v22 = vadd.f32 %v403_v21, %v303_v16 }
  0xfb   : > { %v423_v23 = vmax.f32 %v409_v20, 0.0 }
  0xfc   : > { %v422_v24 = vmax.f32 %v404_v22, 0.0  ;;  %v822_v26 = vpop.f32.mrb[2].mxu0 }
  0xfd   : > { %v419_v27 = vadd.f32 %v822_v26, %v318_v25  ;;  %v413_v28 = vpop.f32.mrb[3].mxu0 }
  0xfe   : > { %v414_v29 = vadd.f32 %v413_v28, %v313_v17  ;;  %v854_v30 = vpack.c.bf16 %v423_v23, %v422_v24 }
  0xff   : > { %v425_v31 = vmax.f32 %v419_v27, 0.0 }
 0x100   : > { %v424_v32 = vmax.f32 %v414_v29, 0.0  ;;  %855 = vmatpush3.bf16.msra.mxu1 %v854_v30  ;;  %v838_v33 = vpop.f32.mrb[4].mxu0 }
 0x101   : > { %v583_v34 = vadd.f32 %v838_v33, %v308_v18  ;;  %v577_v35 = vpop.f32.mrb[5].mxu0  ;;  %856 = vmatprep.subr.bf16.mxu1 %v1010_v14 }
 0x102   : > { %v857_v36 = vpack.c.bf16 %v425_v31, %v424_v32  ;;  %v578_v37 = vadd.f32 %v577_v35, %v303_v16 }
 0x103   : > { %v597_v38 = vmax.f32 %v583_v34, 0.0 }
 0x104   : > { %v596_v39 = vmax.f32 %v578_v37, 0.0  ;;  %858 = vmatpush3.bf16.msra.mxu1 %v857_v36  ;;  %v841_v40 = vpop.f32.mrb[6].mxu0 }
 0x105   : > { %v593_v42 = vadd.f32 %v841_v40, %v318_v25  ;;  %v587_v43 = vpop.f32.mrb[7].mxu0  ;;  %859 = vmatprep.subr.bf16.mxu1 %v1010_v14 }
 0x106   : > { %v860_v44 = vpack.c.bf16 %v597_v38, %v596_v39  ;;  %v588_v45 = vadd.f32 %v587_v43, %v313_v17 }
 0x107   : > { %v599_v46 = vmax.f32 %v593_v42, 0.0  ;;  %832 = vmatmul.mubr.msk.f32.vlgmr.msra.gmra.mrb[0].mxu1 %vm431_vm3, %v297_v41 }
 0x108   : > { %v598_v47 = vmax.f32 %v588_v45, 0.0  ;;  %861 = vmatpush3.bf16.msra.mxu1 %v860_v44  ;;  %850 = vmatprep.mubr.msk.f32.mxu1 %vm1011_vm2, %v1012_v15 }
 0x109   : > { %862 = vmatprep.subr.bf16.mxu1 %v1010_v14 }
 0x10a   : > { %v863_v48 = vpack.c.bf16 %v599_v46, %v598_v47 }
 0x10c   : > { %864 = vmatpush3.bf16.msra.mxu1 %v863_v48 }
 0x10f   : > { %851 = vmatmul.mubr.msk.f32.vlgmr.msra.gmra.mrb[2].mxu1 %vm431_vm3, %v297_v41 }
 0x1da   : > { %v501_v50 = vpop.f32.mrb[0].mxu1 }
 0x1db   : > { %v502_v51 = vadd.f32 %v501_v50, %v429_v49  ;;  %v833_v52 = vpop.f32.mrb[1].mxu1 }
 0x1dd   : > { %505 = vst [vmem:[%s286_s9] sm:$0xf] %v502_v51 }
 0x1e2   : > { %v666_v53 = vpop.f32.mrb[2].mxu1 }
 0x1e3   : > { %v667_v54 = vadd.f32 %v666_v53, %v429_v49  ;;  %v852_v55 = vpop.f32.mrb[3].mxu1 }
 0x1e5   : > { %790 = vst [vmem:[%s286_s9 + $0x4] sm:$0xf] %v667_v54 }
 0x1e6   : > { %942 = shalt.err (!%p939_p7)
}
 0x1e7   : > { %s943_s14 = scalar_lea.hbm %s1168_s15, 128  ;;  %s947_s7 = scalar_lea.hbm %s1224_s5, 256 }
 0x1e8   : > { %p944_p8 = scmp.ne.s32.totalorder %s1168_s15, %s943_s14  ;;  %p948_p13 = scmp.lt.u32.totalorder %s1168_s15, %s1224_s5 }
 0x1e9   : > { %p949_p0 = scmp.lt.u32.totalorder %s947_s7, %s943_s14  ;;  %p951_p2 = scmp.lt.u32.totalorder %s943_s14, %s1168_s15 }
 0x1ea   : > { %p945_p11 = pnand %p944_p8, %p1086_p5 }
 0x1eb   : > { %p950_p1 = por %p949_p0, %p948_p13 }
 0x1ec   : > { %p946_p12 = pneg %p945_p11 }
 0x1ed   : > { %p952_p3 = por %p951_p2, %p950_p1 }
 0x1ef   : > { %p953_p4 = pnand %p952_p3, %p946_p12 }
 0x1f1   : > { %956 = shalt.err (!%p953_p4)
}
 0x1f2   : > { %s1014_s11 = smov 64   ;;  %s1015_s12 = smov 128  }
 0x1f3   : > { %s1016_s13 = smov 4  }
 0x1f4   : > { %865 = dma.vmem_to_hbm [thread:$0]  (%p1086_p5), %s1163_s10, 128, %s1168_s15, %s1172_s16, %s1014_s11, %s1015_s12, %s1016_s13  }
 0x1f5 PF: > { %s703_s17 = sand.u32 1, %s987_s18   ;;  %p868_p6 = pnand %p771_p10, %p1097_p9 }
 0x1f6   : > { %s704_s21 = scalar_lea.sflag [#allocation4], %s703_s17 }
 0x1f7   : > { %982 = dma.done.wait (!%p868_p6), %s704_s21, 128  }
 0x1f8   : > { %984 = vsyncadd (!%p868_p6), %s704_s21, 4294967168  ;;  %s18_s23 = sadd.s32 1, %s1007_s23   ;;  %s1227_s18 = smov %s991_s19 }
 0x1f9   : > { %p15_p7 = scmp.ge.s32.totalorder %s18_s23, 4   ;;  %s1228_s19 = smov %s995_s20 }
 0x1fa   : > { %s1229_s20 = smov %s1095_s30  ;;  %s1230_s21 = smov %s1003_s22 }
 0x1fb   : > { %s1231_s22 = smov %s1233_s26  ;;  %17 = sbr.rel (!%p15_p7) target bundleno = 4 (0x4), region = 123 }
 0x202   :  { %709 = vsyncpa [#allocation4], 1 }
 0x203   :  { %711 = vsyncpa [#allocation4 + $0x1], 1 }

// kernel: tpu_custom_call.1
= control target key start
LH: loop header
LB: loop body
LE: loop exit
PB: predicated region body
PF: predicated region fallthrough
CT: control target
= control target key end

     0   :  { %10 = vsyncpa [#allocation4], 0  ;;  %s1219_s0 = inlined_call_operand.vmem [shape: f32[2,4,256], index: 0, kind: input, shape index: {}]   ;;  %s1220_s1 = inlined_call_operand.vmem [shape: f32[32,4], index: 1, kind: input, shape index: {}]   ;;  %s1221_s2 = inlined_call_operand.vmem [shape: f32[32,1], index: 2, kind: input, shape index: {}]   ;;  %s1222_s3 = inlined_call_operand.vmem [shape: f32[4,32], index: 3, kind: input, shape index: {}]   ;;  %s1223_s4 = inlined_call_operand.vmem [shape: f32[4,1], index: 4, kind: input, shape index: {}]   ;;  %s1224_s5 = inlined_call_operand.hbm [shape: f32[2,4,256], index: 5, kind: output, shape index: {}]  }
   0x1   :  { %12 = vsyncpa [#allocation4 + $0x1], 0  ;;  %s1047_s18 = smov 0   ;;  %s1049_s19 = smov 0  }
   0x2   :  { %s1051_s20 = smov 0   ;;  %s1053_s21 = smov 0  }
   0x3   :  { %s1055_s22 = smov 0   ;;  %s1057_s23 = smov 0  }
   0x4 LB: > { %s768_s24 = sadd.s32 4294967295, %s1007_s23   ;;  %s769_s25 = sadd.s32 4294967294, %s1007_s23   ;;  %s1007_s23 = sphi %s1057_s23, %s18_s23   ;;  %s1003_s22 = sphi %s1055_s22, %s1231_s22   ;;  %s999_s21 = sphi %s1053_s21, %s1230_s21   ;;  %s995_s20 = sphi %s1051_s20, %s1229_s20   ;;  %s991_s19 = sphi %s1049_s19, %s1228_s19   ;;  %s987_s18 = sphi %s1047_s18, %s1227_s18  }
   0x5   : > { %s27_s26 = sadd.s32 1, %s1003_s22  ;;  %s39_s27 = sadd.s32 1, %s995_s20 }
   0x6   : > { %p28_p0 = scmp.ge.s32.totalorder %s27_s26, 2  ;;  %p46_p1 = scmp.ne.s32.totalorder %s995_s20, %s991_s19 }
   0x7   : > { %p47_p2 = scmp.eq.s32.totalorder %s1007_s23, 0  ;;  %p162_p3 = scmp.eq.s32.totalorder %s768_s24, 1 }
   0x8   : > { %s1233_s26 = smov (%p28_p0, %s27_s26), 0  ;;  %p167_p6 = scmp.ne.s32.totalorder %s991_s19, %s987_s18 }
   0x9   : > { %p48_p4 = por %p47_p2, %p46_p1  ;;  %p1086_p5 = por %p162_p3, %p46_p1 }
   0xa   : > { %s35_s29 = ssub.s32 %s1003_s22, %s1233_s26  ;;  %p168_p8 = scmp.eq.s32.totalorder %s769_s25, 1 }
   0xb   : > { %p37_p7 = scmp.eq.s32.totalorder %s35_s29, 0  ;;  %p771_p10 = scmp.ge.s32.totalorder %s1007_s23, 2 }
   0xc   : > { %p1097_p9 = por %p168_p8, %p167_p6 }
   0xd   : > { %s1095_s30 = scalar_select %p37_p7, %s995_s20, %s39_s27  }
   0xe   : > { %196 = sbr.rel (%p771_p10) target bundleno = 28 (0x1c), region = 32 }
  0x15   : > { %199 = sbr.rel (!%p48_p4) target bundleno = 28 (0x1c), region = 36  ;;  %s201_s7 = sand.u32 (%p48_p4), 1, %s995_s20  }
  0x16   : > { %s773_s8 = sshll.u32 (%p48_p4), %s1003_s22, 2  ;;  %s772_s9 = sshll.u32 (%p48_p4), %s201_s7, 3 }
  0x17   : > { %s208_s12 = scalar_lea.vmem (%p48_p4), %s1219_s0, %s773_s8  ;;  %s203_s13 = scalar_lea.vmem (%p48_p4), [#allocation2], %s772_s9 }
  0x18   : > { %v224_v0 = vld [vmem:[%s208_s12] sm:$0xf] (%p48_p4)  ;;  %v226_v1 = vld [vmem:[%s208_s12 + $0x8] sm:$0xf] (%p48_p4) }
  0x19   : > { %225 = vst [vmem:[%s203_s13] sm:$0xf] (%p48_p4), %v224_v0  ;;  %227 = vst [vmem:[%s203_s13 + $0x4] sm:$0xf] (%p48_p4), %v226_v1 }
  0x1c PF: > { %p774_p11 = scmp.ge.s32.totalorder %s1007_s23, 1  ;;  %p253_p12 = scmp.lt.s32.totalorder %s1007_s23, 3 }
  0x1e   : > { %p254_p13 = pnand %p774_p11, %p253_p12 }
  0x1f   : > { %s260_s14 = sand.u32 (!%p254_p13), 1, %s991_s19   ;;  %v289_v2 = vld [vmem:[%s1220_s1] sm:$0xff] (!%p254_p13)  ;;  %vm320_vm0 = vcmask (!%p254_p13), 31744   ;;  %vm333_vm1 = vcmask (!%p254_p13), 1043456   ;;  %v1009_v4 = vmov (!%p254_p13), 0   ;;  %v295_v5 = vld [vmem:[%s1221_s2 + $0x10] sm:$0xff] (!%p254_p13) }
  0x20   : > { %257 = sbr.rel (%p254_p13) target bundleno = 501 (0x1f5), region = 77  ;;  %s1117_s17 = sshll.u32 (!%p254_p13), %s260_s14, 3  ;;  %817 = vmatprep.mubr.msk.f32.mxu0 (!%p254_p13), %vm320_vm0, %v289_v2  ;;  %v293_v3 = vld [vmem:[%s1221_s2] sm:$0xff] (!%p254_p13)  ;;  %927 = vset.pattern.permute.xlu0 (!%p254_p13), %v1009_v4  ;;  %v290_v8 = vld [vmem:[%s1220_s1 + $0x8] sm:$0xff] (!%p254_p13)  ;;  %v291_v9 = vld [vmem:[%s1220_s1 + $0x10] sm:$0xff] (!%p254_p13)  ;;  %v1010_v14 = vmov (!%p254_p13), 0.0|0.0  }
  0x21   : > { %928 = vset.pattern.permute.xlu1 (!%p254_p13), %v1009_v4  ;;  %s262_s7 = scalar_lea.vmem (!%p254_p13), [#allocation2], %s1117_s17  ;;  %302 = vperm.xlu0 (!%p254_p13), %927, %v293_v3   ;;  %v294_v10 = vld [vmem:[%s1221_s2 + $0x8] sm:$0xff] (!%p254_p13)  ;;  %v296_v11 = vld [vmem:[%s1221_s2 + $0x18] sm:$0xff] (!%p254_p13)  ;;  %v298_v13 = vld [vmem:[%s1223_s4] sm:$0xf] (!%p254_p13)  ;;  %vm1011_vm2 = vmmov (!%p254_p13), 0  }
  0x22   : > { %v299_v6 = vld [vmem:[%s262_s7] sm:$0xf] (!%p254_p13)  ;;  %v783_v7 = vld [vmem:[%s262_s7 + $0x4] sm:$0xf] (!%p254_p13)  ;;  %312 = vperm.xlu1 (!%p254_p13), %928, %v295_v5   ;;  %v292_v12 = vld [vmem:[%s1220_s1 + $0x18] sm:$0xff] (!%p254_p13)  ;;  %853 = vmatprep.subr.bf16.mxu1 (!%p254_p13), %v1010_v14  ;;  %v1012_v15 = vmov (!%p254_p13), 0.0  }
  0x23   : > { %815 = vmatprep.subr.msk.mxu0 (!%p254_p13), %vm333_vm1, %v299_v6  ;;  %831 = vmatprep.mubr.msk.f32.mxu1 (!%p254_p13), %vm1011_vm2, %v1012_v15  ;;  %v297_v41 = vld [vmem:[%s1222_s3] sm:$0xf] (!%p254_p13)  ;;  %vm431_vm3 = vcmask (!%p254_p13), 261120   ;;  %s286_s9 = scalar_lea.vmem (!%p254_p13), [#allocation3], %s1117_s17  ;;  %s792_s11 = sshll.u32 (!%p254_p13), %s999_s21, 6 }
  0x24   : > { %816 = vmatpush3.msk.msra.mxu0 (!%p254_p13), %vm333_vm1, %v299_v6  ;;  %s688_s10 = sshll.u32 (!%p254_p13), %s286_s9, 4  ;;  %s1168_s15 = scalar_lea.hbm (!%p254_p13), %s1224_s5, %s792_s11  ;;  %s1163_s10 = int_to_ptr.vmem [resolvable:$true] %s688_s10 }
  0x25   : > { %818 = vmatmul.mubr.msk.f32.vlgmr.msra.gmra.mrb[0].mxu0 (!%p254_p13), %vm320_vm0, %v290_v8  ;;  %834 = vmatprep.subr.msk.mxu0 (!%p254_p13), %vm333_vm1, %v783_v7  ;;  %s1172_s16 = scalar_lea.sflag (!%p254_p13), [#allocation4], %s260_s14  ;;  %s929_s17 = scalar_lea.vmem (!%p254_p13), %s1163_s10, 128 }
  0x26   : > { %835 = vmatpush3.msk.msra.mxu0 (!%p254_p13), %vm333_vm1, %v783_v7  ;;  %820 = vmatprep.mubr.msk.f32.mxu0 (!%p254_p13), %vm320_vm0, %v291_v9  ;;  %p930_p0 = scmp.ne.s32.totalorder (!%p254_p13), %s1163_s10, %s929_s17  ;;  %s1013_s21 = smov (!%p254_p13), [#allocation3]  }
  0x27   : > { %307 = vperm.xlu0 %927, %v294_v10   ;;  %317 = vperm.xlu1 %928, %v296_v11   ;;  %s933_s24 = sshll.u32 %s1013_s21, 4  ;;  %s934_s24 = int_to_ptr.vmem [resolvable:$false] %s933_s24 }
  0x28   : > { %p931_p1 = pnand %p930_p0, %p1086_p5  ;;  %s935_s25 = scalar_lea.vmem %s934_s24, 256 }
  0x29   : > { %821 = vmatmul.mubr.msk.f32.gmra.mrb[2].mxu0 %vm320_vm0, %v292_v12  ;;  %p936_p3 = scmp.lt.s32.totalorder %s1163_s10, %s934_s24  ;;  %p937_p4 = scmp.lt.s32.totalorder %s935_s25, %s929_s17 }
  0x2a   : > { %836 = vmatprep.mubr.msk.f32.mxu0 %vm320_vm0, %v289_v2  ;;  %p932_p2 = pneg %p931_p1 }
  0x2b   : > { %428 = vperm.xlu0 %927, %v298_v13   ;;  %p938_p6 = por %p937_p4, %p936_p3 }
  0x2d   : > { %837 = vmatmul.mubr.msk.f32.vlgmr.msra.gmra.mrb[4].mxu0 %vm320_vm0, %v290_v8  ;;  %p939_p7 = pnand %p938_p6, %p932_p2 }
  0x2e   : > { %839 = vmatprep.mubr.msk.f32.mxu0 %vm320_vm0, %v291_v9 }
  0x31   : > { %840 = vmatmul.mubr.msk.f32.gmra.mrb[6].mxu0 %vm320_vm0, %v292_v12 }
  0xa0   : > { %v303_v16 = vpop.permute.xlu0 %302 }
  0xa1   : > { %v313_v17 = vpop.permute.xlu1 %312 }
  0xa6   : > { %v308_v18 = vpop.permute.xlu0 %307  ;;  %v318_v25 = vpop.permute.xlu1 %317 }
  0xaa   : > { %v429_v49 = vpop.permute.xlu0 %428 }
  0xf8   : > { %v819_v19 = vpop.f32.mrb[0].mxu0 }
  0xf9   : > { %v409_v20 = vadd.f32 %v819_v19, %v308_v18  ;;  %v403_v21 = vpop.f32.mrb[1].mxu0 }
  0xfa   : > { %v404_v22 = vadd.f32 %v403_v21, %v303_v16 }
  0xfb   : > { %v423_v23 = vmax.f32 %v409_v20, 0.0 }
  0xfc   : > { %v422_v24 = vmax.f32 %v404_v22, 0.0  ;;  %v822_v26 = vpop.f32.mrb[2].mxu0 }
  0xfd   : > { %v419_v27 = vadd.f32 %v822_v26, %v318_v25  ;;  %v413_v28 = vpop.f32.mrb[3].mxu0 }
  0xfe   : > { %v414_v29 = vadd.f32 %v413_v28, %v313_v17  ;;  %v854_v30 = vpack.c.bf16 %v423_v23, %v422_v24 }
  0xff   : > { %v425_v31 = vmax.f32 %v419_v27, 0.0 }
 0x100   : > { %v424_v32 = vmax.f32 %v414_v29, 0.0  ;;  %855 = vmatpush3.bf16.msra.mxu1 %v854_v30  ;;  %v838_v33 = vpop.f32.mrb[4].mxu0 }
 0x101   : > { %v583_v34 = vadd.f32 %v838_v33, %v308_v18  ;;  %v577_v35 = vpop.f32.mrb[5].mxu0  ;;  %856 = vmatprep.subr.bf16.mxu1 %v1010_v14 }
 0x102   : > { %v857_v36 = vpack.c.bf16 %v425_v31, %v424_v32  ;;  %v578_v37 = vadd.f32 %v577_v35, %v303_v16 }
 0x103   : > { %v597_v38 = vmax.f32 %v583_v34, 0.0 }
 0x104   : > { %v596_v39 = vmax.f32 %v578_v37, 0.0  ;;  %858 = vmatpush3.bf16.msra.mxu1 %v857_v36  ;;  %v841_v40 = vpop.f32.mrb[6].mxu0 }
 0x105   : > { %v593_v42 = vadd.f32 %v841_v40, %v318_v25  ;;  %v587_v43 = vpop.f32.mrb[7].mxu0  ;;  %859 = vmatprep.subr.bf16.mxu1 %v1010_v14 }
 0x106   : > { %v860_v44 = vpack.c.bf16 %v597_v38, %v596_v39  ;;  %v588_v45 = vadd.f32 %v587_v43, %v313_v17 }
 0x107   : > { %v599_v46 = vmax.f32 %v593_v42, 0.0  ;;  %832 = vmatmul.mubr.msk.f32.vlgmr.msra.gmra.mrb[0].mxu1 %vm431_vm3, %v297_v41 }
 0x108   : > { %v598_v47 = vmax.f32 %v588_v45, 0.0  ;;  %861 = vmatpush3.bf16.msra.mxu1 %v860_v44  ;;  %850 = vmatprep.mubr.msk.f32.mxu1 %vm1011_vm2, %v1012_v15 }
 0x109   : > { %862 = vmatprep.subr.bf16.mxu1 %v1010_v14 }
 0x10a   : > { %v863_v48 = vpack.c.bf16 %v599_v46, %v598_v47 }
 0x10c   : > { %864 = vmatpush3.bf16.msra.mxu1 %v863_v48 }
 0x10f   : > { %851 = vmatmul.mubr.msk.f32.vlgmr.msra.gmra.mrb[2].mxu1 %vm431_vm3, %v297_v41 }
 0x1da   : > { %v501_v50 = vpop.f32.mrb[0].mxu1 }
 0x1db   : > { %v502_v51 = vadd.f32 %v501_v50, %v429_v49  ;;  %v833_v52 = vpop.f32.mrb[1].mxu1 }
 0x1dd   : > { %505 = vst [vmem:[%s286_s9] sm:$0xf] %v502_v51 }
 0x1e2   : > { %v666_v53 = vpop.f32.mrb[2].mxu1 }
 0x1e3   : > { %v667_v54 = vadd.f32 %v666_v53, %v429_v49  ;;  %v852_v55 = vpop.f32.mrb[3].mxu1 }
 0x1e5   : > { %790 = vst [vmem:[%s286_s9 + $0x4] sm:$0xf] %v667_v54 }
 0x1e6   : > { %942 = shalt.err (!%p939_p7)
}
 0x1e7   : > { %s943_s14 = scalar_lea.hbm %s1168_s15, 128  ;;  %s947_s7 = scalar_lea.hbm %s1224_s5, 256 }
 0x1e8   : > { %p944_p8 = scmp.ne.s32.totalorder %s1168_s15, %s943_s14  ;;  %p948_p13 = scmp.lt.u32.totalorder %s1168_s15, %s1224_s5 }
 0x1e9   : > { %p949_p0 = scmp.lt.u32.totalorder %s947_s7, %s943_s14  ;;  %p951_p2 = scmp.lt.u32.totalorder %s943_s14, %s1168_s15 }
 0x1ea   : > { %p945_p11 = pnand %p944_p8, %p1086_p5 }
 0x1eb   : > { %p950_p1 = por %p949_p0, %p948_p13 }
 0x1ec   : > { %p946_p12 = pneg %p945_p11 }
 0x1ed   : > { %p952_p3 = por %p951_p2, %p950_p1 }
 0x1ef   : > { %p953_p4 = pnand %p952_p3, %p946_p12 }
 0x1f1   : > { %956 = shalt.err (!%p953_p4)
}
 0x1f2   : > { %s1014_s11 = smov 64   ;;  %s1015_s12 = smov 128  }
 0x1f3   : > { %s1016_s13 = smov 4  }
 0x1f4   : > { %865 = dma.vmem_to_hbm [thread:$0]  (%p1086_p5), %s1163_s10, 128, %s1168_s15, %s1172_s16, %s1014_s11, %s1015_s12, %s1016_s13  }
 0x1f5 PF: > { %s703_s17 = sand.u32 1, %s987_s18   ;;  %p868_p6 = pnand %p771_p10, %p1097_p9 }
 0x1f6   : > { %s704_s21 = scalar_lea.sflag [#allocation4], %s703_s17 }
 0x1f7   : > { %982 = dma.done.wait (!%p868_p6), %s704_s21, 128  }
 0x1f8   : > { %984 = vsyncadd (!%p868_p6), %s704_s21, 4294967168  ;;  %s18_s23 = sadd.s32 1, %s1007_s23   ;;  %s1227_s18 = smov %s991_s19 }
 0x1f9   : > { %p15_p7 = scmp.ge.s32.totalorder %s18_s23, 4   ;;  %s1228_s19 = smov %s995_s20 }
 0x1fa   : > { %s1229_s20 = smov %s1095_s30  ;;  %s1230_s21 = smov %s1003_s22 }
 0x1fb   : > { %s1231_s22 = smov %s1233_s26  ;;  %17 = sbr.rel (!%p15_p7) target bundleno = 4 (0x4), region = 123 }
 0x202   :  { %709 = vsyncpa [#allocation4], 1 }
 0x203   :  { %711 = vsyncpa [#allocation4 + $0x1], 1 }

</bundles_post_ra>
